<compile_context>
chip_gen: v6e
topology: v6e:2x2x1
jax: 0.10.0
libtpu: 0.0.40
codegen_flags: <defaults>
</compile_context>

<pallas_src>
import functools
from typing import NamedTuple

import jax
import jax.numpy as jnp
from jax.experimental import pallas as pl
from jax.experimental.pallas import tpu as pltpu

_SINGLE_STEP_MAX_ROWS = 1024   # whole batch as one block up to this size (VMEM is ample)
_DEFAULT_BLOCK_B = 512         # ~85% of HBM roofline per tile-size measurements


def _round_up(x: int, m: int) -> int:
    return ((x + m - 1) // m) * m


def _native_sublane(dtype) -> int:
    # f32 -> 8, bf16 -> 16, int8/fp8 -> 32 (native packed-sublane tile)
    return max(8, 32 // jnp.dtype(dtype).itemsize)


class WordLSTMParams(NamedTuple):
    w_ih: jax.Array    # [input_size, 3*H]  in the matmul dtype (f32 or bf16)
    w_hh: jax.Array    # [H, 3*H]           in the matmul dtype
    bias: jax.Array    # [1, 3*H]           always f32 (added after the matmuls)


def prepare_word_lstm_params(weight_ih, weight_hh, bias=None, *, matmul_dtype=jnp.float32):
    """One-time cast of weights to the MXU operand dtype; bias stays f32."""
    H = weight_hh.shape[0]
    if bias is None:
        bias = jnp.zeros((3 * H,), jnp.float32)
    return WordLSTMParams(
        w_ih=weight_ih.astype(matmul_dtype),
        w_hh=weight_hh.astype(matmul_dtype),
        bias=bias.astype(jnp.float32).reshape(1, 3 * H),
    )


def _word_lstm_cell_kernel(x_ref, h_ref, c_ref, wih_ref, whh_ref, b_ref, out_ref, *,
                           hidden_size):
    """One batch tile: two resident-weight MXU dots -> f32 bias add -> cell update."""
    H = hidden_size
    mm_dtype = wih_ref.dtype
    x = x_ref[...].astype(mm_dtype)
    h = h_ref[...].astype(mm_dtype)
    # Two MXU matmuls with f32 accumulation (bf16 operands hit the fast MXU path).
    gates = jnp.dot(x, wih_ref[...], preferred_element_type=jnp.float32)
    gates = gates + jnp.dot(h, whh_ref[...], preferred_element_type=jnp.float32)
    gates = gates + b_ref[...]                      # f32 bias, cheap VPU add
    f = gates[:, 0 * H:1 * H]
    i = gates[:, 1 * H:2 * H]
    g = gates[:, 2 * H:3 * H]
    c_0 = c_ref[...].astype(jnp.float32)
    c_1 = jax.nn.sigmoid(f) * c_0 + jax.nn.sigmoid(i) * jnp.tanh(g)
    out_ref[...] = c_1.astype(out_ref.dtype)


def word_lstm_cell(input_, h_0, c_0, params: WordLSTMParams, *, block_b=None,
                   alias_c0=False):
    """Pallas wrapper.
       input_ [B, input_size], h_0/c_0 [B, hidden_size]  ->  c_1 [B, hidden_size].

    block_b=None: auto (whole batch in one grid step when it fits, else 512-row tiles
    with an even number of steps so v7x's two TensorCores are balanced).
    alias_c0=True: c_1 reuses c_0's buffer (only when the caller no longer needs c_0).
    """
    B, in_sz = input_.shape
    H = h_0.shape[1]
    g3 = 3 * H

    sub = max(_native_sublane(input_.dtype), _native_sublane(h_0.dtype),
              _native_sublane(c_0.dtype))
    if block_b is None:
        block_b = B if B <= _SINGLE_STEP_MAX_ROWS else _DEFAULT_BLOCK_B
    bb = min(block_b, B)
    if bb >= B:
        bb, nb = B, 1                    # single step: block dims == full array dims
    else:
        bb = _round_up(bb, sub)          # dtype-native sublane tile
        nb = pl.cdiv(B, bb)
        if nb > 1 and nb % 2 == 1:       # v7x: even step count across the 2 TensorCores
            bb = max(sub, _round_up(pl.cdiv(B, nb + 1), sub))
            nb = pl.cdiv(B, bb)
        if bb >= B:
            bb, nb = B, 1

    def _bytes(a):
        return a.size * a.dtype.itemsize

    cost = pl.CostEstimate(
        flops=2 * B * (in_sz + H) * g3,
        # sigmoid lowers to ~exp+reciprocal, tanh ~1: ~5 EUP ops per output element
        transcendentals=5 * B * H,
        bytes_accessed=int(_bytes(input_) + _bytes(h_0) + 2 * _bytes(c_0)
                           + _bytes(params.w_ih) + _bytes(params.w_hh)
                           + _bytes(params.bias)),
    )

    kernel = functools.partial(_word_lstm_cell_kernel, hidden_size=H)
    return pl.pallas_call(
        kernel,
        out_shape=jax.ShapeDtypeStruct((B, H), c_0.dtype),
        grid=(nb,),
        in_specs=[
            pl.BlockSpec((bb, in_sz), lambda b: (b, 0)),
            pl.BlockSpec((bb, H), lambda b: (b, 0)),
            pl.BlockSpec((bb, H), lambda b: (b, 0)),
            # Constant index_maps: weights/bias DMA'd once, resident across grid steps.
            pl.BlockSpec((in_sz, g3), lambda b: (0, 0)),
            pl.BlockSpec((H, g3), lambda b: (0, 0)),
            pl.BlockSpec((1, g3), lambda b: (0, 0)),
        ],
        out_specs=pl.BlockSpec((bb, H), lambda b: (b, 0)),
        compiler_params=pltpu.CompilerParams(
            dimension_semantics=("parallel",),   # megacore sharding on v7x
        ),
        cost_estimate=cost,
        input_output_aliases=({2: 0} if alias_c0 else {}),
    )(input_, h_0, c_0, params.w_ih, params.w_hh, params.bias)


def init_params(key, input_size, hidden_size, dtype=jnp.float32):
    """Matches reset_parameters(): orthogonal W_ih, tiled-identity W_hh, zero bias."""
    weight_ih = jax.nn.initializers.orthogonal()(key, (input_size, 3 * hidden_size), dtype)
    weight_hh = jnp.tile(jnp.eye(hidden_size, dtype=dtype), (1, 3))
    bias = jnp.zeros((3 * hidden_size,), dtype=dtype)
    return weight_ih, weight_hh, bias


def reference(input_, h_0, c_0, weight_ih, weight_hh, bias):
    H = h_0.shape[1]
    gates = bias[None, :] + h_0 @ weight_hh + input_ @ weight_ih
    f, i, g = gates[:, :H], gates[:, H:2 * H], gates[:, 2 * H:]
    return jax.nn.sigmoid(f) * c_0 + jax.nn.sigmoid(i) * jnp.tanh(g)


if __name__ == "__main__":
    B, input_size, hidden_size = 2, 16, 32

    key = jax.random.PRNGKey(0)
    k_w, k_b, k_x, k_h, k_c, k_big = jax.random.split(key, 6)

    weight_ih, weight_hh, _ = init_params(k_w, input_size, hidden_size)
    # Use a non-zero bias so the f32 bias path is actually exercised numerically.
    bias = 0.1 * jax.random.normal(k_b, (3 * hidden_size,), jnp.float32)

    x = jax.random.normal(k_x, (B, input_size), jnp.float32)
    h0 = jax.random.normal(k_h, (B, hidden_size), jnp.float32)
    c0 = jax.random.normal(k_c, (B, hidden_size), jnp.float32)

    params_f32 = prepare_word_lstm_params(weight_ih, weight_hh, bias)

    # --- tiny batch, single grid step, f32 MXU operands ---
    c1 = word_lstm_cell(x, h0, c0, params_f32)
    jax.block_until_ready(c1)
    c1_ref = reference(x, h0, c0, weight_ih, weight_hh, bias)
    assert c1.shape == (B, hidden_size)
    assert jnp.allclose(c1, c1_ref, atol=1e-5, rtol=1e-5), "f32 mismatch vs reference"

    # --- many lattice words in one call: auto single-step (whole batch = one block) ---
    Bw = 300
    kx2, kh2, kc2 = jax.random.split(k_big, 3)
    xw = jax.random.normal(kx2, (Bw, input_size), jnp.float32)
    hw = jax.random.normal(kh2, (Bw, hidden_size), jnp.float32)
    cw = jax.random.normal(kc2, (Bw, hidden_size), jnp.float32)
    c1w_ref = reference(xw, hw, cw, weight_ih, weight_hh, bias)

    c1w = word_lstm_cell(xw, hw, cw, params_f32)
    jax.block_until_ready(c1w)
    assert jnp.allclose(c1w, c1w_ref, atol=1e-5, rtol=1e-5), "single-step batch mismatch"

    # --- explicit multi-step tiling (even step count for v7x's two TensorCores;
    #     the partial boundary block is handled by Pallas) ---
    c1w_tiled = word_lstm_cell(xw, hw, cw, params_f32, block_b=128)
    jax.block_until_ready(c1w_tiled)
    assert jnp.allclose(c1w_tiled, c1w_ref, atol=1e-5, rtol=1e-5), "tiled batch mismatch"

    # --- bf16 MXU operands (fast path on v5e/v6e/v7x), f32 bias + f32 gate math ---
    params_bf16 = prepare_word_lstm_params(weight_ih, weight_hh, bias,
                                           matmul_dtype=jnp.bfloat16)
    c1w_bf16 = word_lstm_cell(xw, hw, cw, params_bf16)
    jax.block_until_ready(c1w_bf16)
    assert float(jnp.max(jnp.abs(c1w_bf16 - c1w_ref))) < 0.2, "bf16 path sanity check failed"

    # --- c_0 aliased to the output (c_0 dead after the call, in-place lattice update) ---
    @jax.jit
    def step_aliased(x_, h_, c_, w_ih, w_hh, b_):
        return word_lstm_cell(x_, h_, c_, WordLSTMParams(w_ih, w_hh, b_), alias_c0=True)

    c1w_alias = step_aliased(xw, hw, cw, params_f32.w_ih, params_f32.w_hh, params_f32.bias)
    jax.block_until_ready(c1w_alias)
    assert jnp.allclose(c1w_alias, c1w_ref, atol=1e-5, rtol=1e-5), "aliased-output mismatch"

    print("KERNEL_OK")
</pallas_src>

<mosaic_0001>
module attributes {stable_mosaic.version = 11 : i64} {
  func.func @_word_lstm_cell_kernel(%arg0: i32, %arg1: memref<2x16xf32, #tpu.memory_space<vmem>>, %arg2: memref<2x32xf32, #tpu.memory_space<vmem>>, %arg3: memref<2x32xf32, #tpu.memory_space<vmem>>, %arg4: memref<16x96xf32, #tpu.memory_space<vmem>>, %arg5: memref<32x96xf32, #tpu.memory_space<vmem>>, %arg6: memref<1x96xf32, #tpu.memory_space<vmem>>, %arg7: memref<2x32xf32, #tpu.memory_space<vmem>>) attributes {dimension_semantics = [#tpu.dimension_semantics<parallel>], iteration_bounds = array<i64: 1>, scalar_prefetch = 0 : i64, scratch_operands = 0 : i64, tpu.core_type = #tpu.core_type<tc>, window_params = [{transform_indices = @transform_0, window_bounds = array<i64: 2, 16>}, {transform_indices = @transform_1, window_bounds = array<i64: 2, 32>}, {transform_indices = @transform_2, window_bounds = array<i64: 2, 32>}, {pipeline_mode = #tpu.pipeline_mode<synchronous>, transform_indices = @transform_3, window_bounds = array<i64: 16, 96>}, {pipeline_mode = #tpu.pipeline_mode<synchronous>, transform_indices = @transform_4, window_bounds = array<i64: 32, 96>}, {pipeline_mode = #tpu.pipeline_mode<synchronous>, transform_indices = @transform_5, window_bounds = array<i64: 1, 96>}, {transform_indices = @transform_6, window_bounds = array<i64: 2, 32>}]} {
    %c0 = arith.constant 0 : index
    %c0_0 = arith.constant 0 : index
    %0 = vector.load %arg1[%c0, %c0_0] : memref<2x16xf32, #tpu.memory_space<vmem>>, vector<2x16xf32>
    %c0_1 = arith.constant 0 : index
    %c0_2 = arith.constant 0 : index
    %1 = vector.load %arg2[%c0_1, %c0_2] : memref<2x32xf32, #tpu.memory_space<vmem>>, vector<2x32xf32>
    %c0_3 = arith.constant 0 : index
    %c0_4 = arith.constant 0 : index
    %2 = vector.load %arg4[%c0_3, %c0_4] : memref<16x96xf32, #tpu.memory_space<vmem>>, vector<16x96xf32>
    %cst = arith.constant dense<0.000000e+00> : vector<2x96xf32>
    %3 = tpu.matmul %0, %2, %cst {dimension_numbers = #tpu.dot_dimension_numbers<[1], [0], [0], [1], [0, 0, 1, 1], [], []>} : vector<2x16xf32>, vector<16x96xf32>, vector<2x96xf32> -> vector<2x96xf32>
    %c0_5 = arith.constant 0 : index
    %c0_6 = arith.constant 0 : index
    %4 = vector.load %arg5[%c0_5, %c0_6] : memref<32x96xf32, #tpu.memory_space<vmem>>, vector<32x96xf32>
    %cst_7 = arith.constant dense<0.000000e+00> : vector<2x96xf32>
    %5 = tpu.matmul %1, %4, %cst_7 {dimension_numbers = #tpu.dot_dimension_numbers<[1], [0], [0], [1], [0, 0, 1, 1], [], []>} : vector<2x32xf32>, vector<32x96xf32>, vector<2x96xf32> -> vector<2x96xf32>
    %6 = arith.addf %3, %5 : vector<2x96xf32>
    %c0_8 = arith.constant 0 : index
    %c0_9 = arith.constant 0 : index
    %7 = vector.load %arg6[%c0_8, %c0_9] : memref<1x96xf32, #tpu.memory_space<vmem>>, vector<1x96xf32>
    %8 = vector.broadcast %7 : vector<1x96xf32> to vector<2x96xf32>
    %9 = arith.addf %6, %8 : vector<2x96xf32>
    %10 = vector.extract_strided_slice %9 {offsets = [0, 0], sizes = [2, 32], strides = [1, 1]} : vector<2x96xf32> to vector<2x32xf32>
    %11 = vector.extract_strided_slice %9 {offsets = [0, 32], sizes = [2, 32], strides = [1, 1]} : vector<2x96xf32> to vector<2x32xf32>
    %12 = vector.extract_strided_slice %9 {offsets = [0, 64], sizes = [2, 32], strides = [1, 1]} : vector<2x96xf32> to vector<2x32xf32>
    %c0_10 = arith.constant 0 : index
    %c0_11 = arith.constant 0 : index
    %13 = vector.load %arg3[%c0_10, %c0_11] : memref<2x32xf32, #tpu.memory_space<vmem>>, vector<2x32xf32>
    %14 = arith.negf %10 : vector<2x32xf32>
    %15 = math.exp %14 : vector<2x32xf32>
    %cst_12 = arith.constant 1.000000e+00 : f32
    %16 = vector.broadcast %cst_12 : f32 to vector<2x32xf32>
    %17 = arith.addf %16, %15 : vector<2x32xf32>
    %18 = arith.divf %16, %17 : vector<2x32xf32>
    %19 = arith.mulf %18, %13 : vector<2x32xf32>
    %20 = arith.negf %11 : vector<2x32xf32>
    %21 = math.exp %20 : vector<2x32xf32>
    %cst_13 = arith.constant 1.000000e+00 : f32
    %22 = vector.broadcast %cst_13 : f32 to vector<2x32xf32>
    %23 = arith.addf %22, %21 : vector<2x32xf32>
    %24 = arith.divf %22, %23 : vector<2x32xf32>
    %25 = math.tanh %12 : vector<2x32xf32>
    %26 = arith.mulf %24, %25 : vector<2x32xf32>
    %27 = arith.addf %19, %26 : vector<2x32xf32>
    %c0_14 = arith.constant 0 : index
    %c0_15 = arith.constant 0 : index
    %28 = vector.load %arg7[%c0_14, %c0_15] : memref<2x32xf32, #tpu.memory_space<vmem>>, vector<2x32xf32>
    tpu.vector_store %arg7[%c0_14, %c0_15], %27 {strides = array<i32>} : memref<2x32xf32, #tpu.memory_space<vmem>>, vector<2x32xf32>,
    return
  }
  func.func @transform_0(%arg0: i32) -> (i32, i32) {
    %c0_i32 = arith.constant 0 : i32
    %c0_i32_0 = arith.constant 0 : i32
    return %arg0, %c0_i32 : i32, i32
  }
  func.func @transform_1(%arg0: i32) -> (i32, i32) {
    %c0_i32 = arith.constant 0 : i32
    %c0_i32_0 = arith.constant 0 : i32
    return %arg0, %c0_i32 : i32, i32
  }
  func.func @transform_2(%arg0: i32) -> (i32, i32) {
    %c0_i32 = arith.constant 0 : i32
    %c0_i32_0 = arith.constant 0 : i32
    return %arg0, %c0_i32 : i32, i32
  }
  func.func @transform_3(%arg0: i32) -> (i32, i32) {
    %c0_i32 = arith.constant 0 : i32
    %c0_i32_0 = arith.constant 0 : i32
    %c0_i32_1 = arith.constant 0 : i32
    return %c0_i32, %c0_i32_0 : i32, i32
  }
  func.func @transform_4(%arg0: i32) -> (i32, i32) {
    %c0_i32 = arith.constant 0 : i32
    %c0_i32_0 = arith.constant 0 : i32
    %c0_i32_1 = arith.constant 0 : i32
    return %c0_i32, %c0_i32_0 : i32, i32
  }
  func.func @transform_5(%arg0: i32) -> (i32, i32) {
    %c0_i32 = arith.constant 0 : i32
    %c0_i32_0 = arith.constant 0 : i32
    %c0_i32_1 = arith.constant 0 : i32
    return %c0_i32, %c0_i32_0 : i32, i32
  }
  func.func @transform_6(%arg0: i32) -> (i32, i32) {
    %c0_i32 = arith.constant 0 : i32
    %c0_i32_0 = arith.constant 0 : i32
    return %arg0, %c0_i32 : i32, i32
  }
}

</mosaic_0001>

<bundles_post_ra>
// kernel: tpu_custom_call.1
= control target key start
LH: loop header
LB: loop body
LE: loop exit
PB: predicated region body
PF: predicated region fallthrough
CT: control target
= control target key end

     0   :  { %11 = vsyncpa [#allocation3], 0  ;;  %s497_s0 = inlined_call_operand.hbm [shape: f32[2,16], index: 0, kind: input, shape index: {}]   ;;  %s498_s1 = inlined_call_operand.hbm [shape: f32[2,32], index: 1, kind: input, shape index: {}]   ;;  %s499_s2 = inlined_call_operand.vmem [shape: f32[2,32], index: 2, kind: input, shape index: {}]   ;;  %s500_s3 = inlined_call_operand.hbm [shape: f32[16,96], index: 3, kind: input, shape index: {}]   ;;  %s501_s4 = inlined_call_operand.hbm [shape: f32[32,96], index: 4, kind: input, shape index: {}]   ;;  %s502_s5 = inlined_call_operand.vmem [shape: f32[1,96], index: 5, kind: input, shape index: {}]   ;;  %s503_s6 = inlined_call_operand.hbm [shape: f32[2,32], index: 6, kind: output, shape index: {}]  }
   0x1   :  { %12 = vsyncpa [#allocation6], 0 }
   0x2   :  { %13 = vsyncpa [#allocation9], 0 }
   0x3   :  { %14 = vsyncpa [#allocation4], 0  ;;  %s431_s21 = smov [#allocation5]   ;;  %s432_s23 = smov [#allocation2]  }
   0x4   :  { %s31_s22 = sshll.u32 %s431_s21, 4  ;;  %s21_s24 = sshll.u32 %s432_s23, 4  ;;  %s32_s22 = int_to_ptr.vmem [resolvable:$true] %s31_s22  ;;  %s22_s24 = int_to_ptr.vmem [resolvable:$true] %s21_s24 }
   0x5   :  { %s331_s25 = scalar_lea.vmem %s32_s22, 32  ;;  %p336_p1 = scmp.lt.s32.totalorder %s32_s22, %s32_s22 }
   0x6   :  { %p332_p0 = scmp.ne.s32.totalorder %s32_s22, %s331_s25  ;;  %p337_p2 = scmp.lt.s32.totalorder %s331_s25, %s331_s25 }
   0x8   :  { %p338_p3 = por %p337_p2, %p336_p1 }
   0xa   :  { %p339_p4 = pnand %p338_p3, %p332_p0 }
   0xc   :  { %342 = shalt.err (!%p339_p4)
}
   0xd   :  { %34 = dma.hbm_to_vmem [thread:$0]  %s498_s1, 32, %s32_s22, [#allocation6]  }
   0xe   :  { %s351_s28 = scalar_lea.vmem %s22_s24, 32  ;;  %p356_p6 = scmp.lt.s32.totalorder %s22_s24, %s22_s24 }
   0xf   :  { %p352_p5 = scmp.ne.s32.totalorder %s22_s24, %s351_s28  ;;  %p357_p7 = scmp.lt.s32.totalorder %s351_s28, %s351_s28 }
  0x11   :  { %p358_p8 = por %p357_p7, %p356_p6 }
  0x13   :  { %p359_p9 = pnand %p358_p8, %p352_p5 }
  0x15   :  { %362 = shalt.err (!%p359_p9)
}
  0x16   :  { %24 = dma.hbm_to_vmem [thread:$0]  %s497_s0, 32, %s22_s24, [#allocation3]  }
  0x17   :  { %s433_s7 = smov [#allocation7]  }
  0x18   :  { %s42_s8 = sshll.u32 %s433_s7, 4  ;;  %s43_s8 = int_to_ptr.vmem [resolvable:$true] %s42_s8 }
  0x19   :  { %s371_s9 = scalar_lea.vmem %s43_s8, 256  ;;  %p376_p11 = scmp.lt.s32.totalorder %s43_s8, %s43_s8 }
  0x1a   :  { %p372_p10 = scmp.ne.s32.totalorder %s43_s8, %s371_s9  ;;  %p377_p12 = scmp.lt.s32.totalorder %s371_s9, %s371_s9 }
  0x1c   :  { %p378_p13 = por %p377_p12, %p376_p11 }
  0x1e   :  { %p379_p0 = pnand %p378_p13, %p372_p10 }
  0x20   :  { %382 = shalt.err (!%p379_p0)
}
  0x21   :  { %s434_s1 = smov 128   ;;  %s435_s10 = smov 8  }
  0x22   :  { %48 = dma.hbm_to_vmem [thread:$0]  %s500_s3, 256, %s43_s8, [#allocation6], %s434_s1, %s434_s1, %s435_s10  }
  0x23   :  { %s436_s13 = smov [#allocation8]  }
  0x24   :  { %s54_s14 = sshll.u32 %s436_s13, 4  ;;  %s55_s14 = int_to_ptr.vmem [resolvable:$true] %s54_s14 }
  0x25   :  { %s391_s0 = scalar_lea.vmem %s55_s14, 512  ;;  %p396_p2 = scmp.lt.s32.totalorder %s55_s14, %s55_s14 }
  0x26   :  { %p392_p1 = scmp.ne.s32.totalorder %s55_s14, %s391_s0  ;;  %p397_p3 = scmp.lt.s32.totalorder %s391_s0, %s391_s0 }
  0x28   :  { %p398_p4 = por %p397_p3, %p396_p2 }
  0x2a   :  { %p399_p5 = pnand %p398_p4, %p392_p1 }
  0x2c   :  { %402 = shalt.err (!%p399_p5)
}
  0x2d   :  { %60 = dma.hbm_to_vmem [thread:$0]  %s501_s4, 512, %s55_s14, [#allocation9], %s434_s1, %s434_s1, %s435_s10  }
  0x2e   :  { %423 = dma.done.wait [#allocation3], 32  }
  0x2f   :  { %424 = vsyncadd [#allocation3], 4294967264 }
  0x30   :  { %425 = dma.done.wait [#allocation6], 288  }
  0x31   :  { %426 = vsyncadd [#allocation6], 4294967008 }
  0x32   :  { %427 = dma.done.wait [#allocation9], 512  }
  0x33   :  { %428 = vsyncadd [#allocation9], 4294966784  ;;  %v437_v0 = vmov 0.0   ;;  %vm438_vm0 = vmmov 0   ;;  %v82_v1 = vld [vmem:[#allocation8 + $0x18] sm:$0xff]  ;;  %v81_v2 = vld [vmem:[#allocation8 + $0x10] sm:$0xff] }
  0x34   :  { %289 = vmatprep.subr.mxu0 %v437_v0  ;;  %300 = vmatprep.subr.mxu1 %v437_v0  ;;  %v78_v3 = vld [vmem:[#allocation7 + $0x8] sm:$0xff]  ;;  %v77_v4 = vld [vmem:[#allocation7] sm:$0xff]  ;;  %v75_v5 = vld [vmem:[#allocation2] sm:$0x3]  ;;  %vm157_vm1 = vcmask 130048   ;;  %vm83_vm2 = vcmask 261120  }
  0x35   :  { %304 = vmatprep.mubr.msk.f32.mxu1 %vm438_vm0, %v437_v0  ;;  %297 = vmatprep.mubr.msk.f32.mxu0 %vm438_vm0, %v437_v0  ;;  %v80_v6 = vld [vmem:[#allocation8 + $0x8] sm:$0xff]  ;;  %v79_v7 = vld [vmem:[#allocation8] sm:$0xff]  ;;  %s439_s17 = smov 96   ;;  %vm258_vm3 = vcmask 254976  }
  0x36   :  { %290 = vmatpush3.msra.mxu0 %v82_v1  ;;  %301 = vmatpush3.msra.mxu1 %v78_v3  ;;  %v76_v8 = vld [vmem:[#allocation5] sm:$0x3]  ;;  %v279_v12 = vld [vmem:[%s502_s5] ss:$0 sm:$0xff]  ;;  %s440_s5 = smov [#allocation10]  }
  0x37   :  { %291 = vmatprep.subr.mxu0 %v437_v0  ;;  %302 = vmatprep.subr.mxu1 %v437_v0  ;;  %v239_v23 = vld [vmem:[%s499_s2] sm:$0x3]  ;;  %s266_s20 = sshll.u32 %s440_s5, 4  ;;  %s267_s20 = int_to_ptr.vmem [resolvable:$true] %s266_s20 }
  0x38   :  { %292 = vmatpush3.msra.mxu0 %v81_v2  ;;  %303 = vmatpush3.msra.mxu1 %v77_v4  ;;  %s403_s21 = scalar_lea.vmem %s267_s20, 32  ;;  %p408_p7 = scmp.lt.s32.totalorder %s267_s20, %s267_s20 }
  0x39   :  { %293 = vmatprep.subr.mxu0 %v437_v0  ;;  %305 = vmatmul.mubr.msk.f32.vlgmr.msra.gmra.mxu1 %vm157_vm1, %v75_v5  ;;  %p404_p6 = scmp.ne.s32.totalorder %s267_s20, %s403_s21  ;;  %p409_p8 = scmp.lt.s32.totalorder %s403_s21, %s403_s21 }
  0x3a   :  { %294 = vmatpush3.msra.mxu0 %v80_v6 }
  0x3b   :  { %295 = vmatprep.subr.mxu0 %v437_v0  ;;  %p410_p9 = por %p409_p8, %p408_p7 }
  0x3c   :  { %296 = vmatpush3.msra.mxu0 %v79_v7 }
  0x3d   :  { %298 = vmatmul.mubr.msk.f32.vlgmr.msra.gmra.mxu0 %vm83_vm2, %v76_v8  ;;  %p411_p10 = pnand %p410_p9, %p404_p6 }
  0xf9   :  { %v227_v9 = vpop.f32.mrf.mxu1 }
  0xfb   :  { %v306_v10 = vpop.f32.mrf.mxu1 }
  0xfd   :  { %v153_v11 = vpop.f32.mrf.mxu0 }
  0xfe   :  { %v228_v13 = vadd.f32 %v227_v9, %v153_v11 }
  0xff   :  { %v299_v14 = vpop.f32.mrf.mxu0 }
 0x100   :  { %v238_v15 = vadd.f32 %v279_v12, %v228_v13 }
 0x102   :  { %317 = vtanh.f32 %v238_v15  ;;  %v280_v17 = vmul.f32 -1.442695, %v238_v15 }
 0x104   :  { %319 = vpow2.f32 %v280_v17 }
 0x10f   :  { %v318_v16 = vpop.eup %317 }
 0x110   :  { %249 = vrot.lane.b32.xlu0 %v318_v16, %s439_s17 }
 0x111   :  { %v320_v18 = vpop.eup %319 }
 0x112   :  { %v243_v19 = vadd.f32 1.0, %v320_v18 }
 0x114   :  { %321 = vrcp.f32 %v243_v19 }
 0x121   :  { %v322_v20 = vpop.eup %321 }
 0x122   :  { %v246_v24 = vmul.f32 %v322_v20, %v239_v23 }
 0x182   :  { %v250_v21 = vpop.permute.xlu0 %249 }
 0x183   :  { %v252_v22 = vmul.f32 %v322_v20, %v250_v21 }
 0x185   :  { %254 = vrot.lane.b32.xlu0 %v252_v22, %s439_s17 }
 0x1f7   :  { %v255_v25 = vpop.permute.xlu0 %254 }
 0x1f8   :  { %v257_v26 = vadd.f32 %v255_v25, %v246_v24 }
 0x1fa   :  { %259 = vst.msk [vmem:[#allocation10] sm:$0x3] %vm258_vm3, %v257_v26 }
 0x1fb   :  { %414 = shalt.err (!%p411_p10)
}
 0x1fc   :  { %269 = dma.vmem_to_hbm [thread:$0]  %s267_s20, 32, %s503_s6, [#allocation4]  }
 0x1fd   :  { %429 = dma.done.wait [#allocation4], 32  }
 0x1fe   :  { %430 = vsyncadd [#allocation4], 4294967264 }
 0x1ff   :  { %273 = vsyncpa [#allocation3], 1 }
 0x200   :  { %274 = vsyncpa [#allocation6], 1 }
 0x201   :  { %275 = vsyncpa [#allocation9], 1 }
 0x202   :  { %276 = vsyncpa [#allocation4], 1 }

</bundles_post_ra>
